<compile_context>
chip_gen: v6e
topology: v6e:2x2x1
jax: 0.10.0
libtpu: 0.0.40
codegen_flags: <defaults>
</compile_context>

<pallas_src>
import functools

import jax
import jax.numpy as jnp
from jax.experimental import pallas as pl
from jax.experimental.pallas import tpu as pltpu

_SMALL_N_ELEMENTS = 256 * 1024  # below this, fused jnp.clip beats a kernel launch
_LANES = 128


def _round_up(a: int, m: int) -> int:
    return ((a + m - 1) // m) * m


@functools.lru_cache(maxsize=None)
def _tpu_config():
    """(block_bytes, vmem_limit_bytes, has_two_tensorcores) per chip generation."""
    try:
        kind = jax.devices()[0].device_kind.lower()
    except Exception:  # pragma: no cover - defensive
        kind = ""
    if "v7" in kind:
        # 3.2 TB/s HBM per TC: big blocks amortize per-step overhead; 2 TCs.
        # in+out double-buffered = 4x block = 32 MiB; limit 40 MiB < 64 MiB phys.
        return 8 * 1024 * 1024, 40 * 1024 * 1024, True
    if "v6" in kind:
        # 4 MiB blocks -> 16 MiB pipelined, within the 32 MiB scoped default.
        return 4 * 1024 * 1024, 32 * 1024 * 1024, False
    # v5e / unknown: stay within the 16 MiB scoped-VMEM default.
    return 2 * 1024 * 1024, 16 * 1024 * 1024, False


def _clamp_kernel(bounds_ref, x_ref, o_ref):
    x = x_ref[...]
    lo = bounds_ref[0].astype(x.dtype)
    hi = bounds_ref[1].astype(x.dtype)
    # max-then-min matches torch.clamp (min > max collapses to max_val);
    # NaNs propagate as in torch.
    o_ref[...] = jnp.minimum(jnp.maximum(x, lo), hi)


def _choose_2d(n: int):
    """Pick (rows, cols) with rows*cols == n and cols a lane-dense multiple of 128."""
    for cols in (1024, 512, 256, 128):
        if n % cols == 0:
            return n // cols, cols
    return None


def _clamp_2d(x2d: jax.Array, bounds: jax.Array) -> jax.Array:
    rows, cols = x2d.shape
    itemsize = jnp.dtype(x2d.dtype).itemsize
    block_bytes, vmem_limit, two_cores = _tpu_config()

    # Target rows per block (~block_bytes of input), multiple of 32 sublanes.
    target_rows = max(32, block_bytes // (cols * itemsize))
    target_rows = (target_rows // 32) * 32

    if rows <= target_rows:
        if two_cores and rows >= 128:
            # Two balanced "parallel" steps so both v7x TCs carry ~half the bytes.
            tile_rows = min(rows, _round_up(pl.cdiv(rows, 2), 32))
        else:
            # Single-TC chips: one full-extent block (no pointless serial split).
            tile_rows = rows
    else:
        if two_cores:
            # Even, balanced step count for megacore sharding.
            n_steps = 2 * pl.cdiv(rows, 2 * target_rows)
            tile_rows = min(rows, _round_up(pl.cdiv(rows, n_steps), 32))
        else:
            tile_rows = target_rows

    grid = (pl.cdiv(rows, tile_rows),)

    return pl.pallas_call(
        _clamp_kernel,
        out_shape=jax.ShapeDtypeStruct((rows, cols), x2d.dtype),
        grid_spec=pltpu.PrefetchScalarGridSpec(
            num_scalar_prefetch=1,
            grid=grid,
            in_specs=[pl.BlockSpec((tile_rows, cols), lambda i, bounds: (i, 0))],
            out_specs=pl.BlockSpec((tile_rows, cols), lambda i, bounds: (i, 0)),
        ),
        compiler_params=pltpu.CompilerParams(
            dimension_semantics=("parallel",),
            vmem_limit_bytes=vmem_limit,
        ),
    )(bounds, x2d)


def output_range_postprocess(imgs, min_val: float = 0.0, max_val: float = 1.0,
                             *, force_pallas: bool = False):
    """JAX/Pallas equivalent of OutputRangePostProcessor.forward.

    Accepts a single array (any rank, e.g. NCHW) or a list/tuple of arrays and
    clamps every element to [min_val, max_val].
    """
    if isinstance(imgs, (list, tuple)):
        return [output_range_postprocess(im, min_val, max_val, force_pallas=force_pallas)
                for im in imgs]

    x = imgs
    n = x.size

    # Small tensors: the fixed pallas_call launch + DMA setup dominates; let
    # XLA fuse the clip into the producer instead.
    if n == 0 or (not force_pallas and n < _SMALL_N_ELEMENTS):
        return jnp.clip(x, min_val, max_val)

    shape2d = _choose_2d(n)
    if shape2d is None:
        # Ragged element count (not a multiple of 128): pad+kernel+slice would
        # move ~3x the bytes of a bandwidth-bound op; stream-clip via XLA.
        return jnp.clip(x, min_val, max_val)

    rows, cols = shape2d
    bounds = jnp.asarray([min_val, max_val], dtype=jnp.float32)
    # Zero-copy path: metadata-only reshape to a lane-dense 2-D slab.
    y2d = _clamp_2d(x.reshape(rows, cols), bounds)
    return y2d.reshape(x.shape)


if __name__ == "__main__":
    key = jax.random.PRNGKey(0)
    k1, k2, k3, k4 = jax.random.split(key, 4)

    # 1) Single-tensor NCHW batch, values outside [0, 1]; force the Pallas path
    #    so the kernel itself is exercised at the module's typical small shape.
    x = jax.random.normal(k1, (2, 4, 16, 16), dtype=jnp.float32) * 2.0
    y = jax.block_until_ready(output_range_postprocess(x, 0.0, 1.0, force_pallas=True))
    assert y.shape == x.shape and y.dtype == x.dtype
    assert jnp.allclose(y, jnp.clip(x, 0.0, 1.0)), "single-tensor clamp mismatch"

    # 2) List path (auto heuristic -> fused clip for these small tensors).
    xs = [jax.random.normal(k2, (2, 4, 16, 16), dtype=jnp.float32) * 3.0, x]
    ys = [jax.block_until_ready(t) for t in output_range_postprocess(xs, 0.0, 1.0)]
    for t_in, t_out in zip(xs, ys):
        assert jnp.allclose(t_out, jnp.clip(t_in, 0.0, 1.0)), "list clamp mismatch"

    # 3) Larger batch: exceeds the small-tensor threshold, multi-block grid on
    #    every chip generation.
    xb = jax.random.normal(k3, (2, 3, 512, 512), dtype=jnp.float32) * 2.0
    yb = jax.block_until_ready(output_range_postprocess(xb, 0.0, 1.0))
    assert jnp.allclose(yb, jnp.clip(xb, 0.0, 1.0)), "multi-block clamp mismatch"

    # 4) Ragged (non-multiple-of-128 element count) -> fused-clip fallback.
    xr = jax.random.normal(k4, (3, 5, 7), dtype=jnp.float32) * 2.0
    yr = jax.block_until_ready(output_range_postprocess(xr, 0.0, 1.0))
    assert jnp.allclose(yr, jnp.clip(xr, 0.0, 1.0)), "ragged clamp mismatch"

    print("KERNEL_OK")
</pallas_src>

<mosaic_0001>
module attributes {stable_mosaic.version = 11 : i64} {
  func.func @_clamp_kernel(%arg0: i32, %arg1: memref<2xf32, #tpu.memory_space<smem>>, %arg2: memref<2x1024xf32, #tpu.memory_space<vmem>>, %arg3: memref<2x1024xf32, #tpu.memory_space<vmem>>) attributes {dimension_semantics = [#tpu.dimension_semantics<parallel>], iteration_bounds = array<i64: 1>, scalar_prefetch = 1 : i64, scratch_operands = 0 : i64, tpu.core_type = #tpu.core_type<tc>, window_params = [{transform_indices = @transform_0, window_bounds = array<i64: 2, 1024>}, {transform_indices = @transform_1, window_bounds = array<i64: 2, 1024>}]} {
    %c0 = arith.constant 0 : index
    %c0_0 = arith.constant 0 : index
    %0 = vector.load %arg2[%c0, %c0_0] : memref<2x1024xf32, #tpu.memory_space<vmem>>, vector<2x1024xf32>
    %c0_1 = arith.constant 0 : index
    %1 = memref.load %arg1[%c0_1] : memref<2xf32, #tpu.memory_space<smem>>
    %c1 = arith.constant 1 : index
    %2 = memref.load %arg1[%c1] : memref<2xf32, #tpu.memory_space<smem>>
    %3 = vector.broadcast %1 : f32 to vector<2x1024xf32>
    %4 = arith.maximumf %0, %3 : vector<2x1024xf32>
    %5 = vector.broadcast %2 : f32 to vector<2x1024xf32>
    %6 = arith.minimumf %4, %5 : vector<2x1024xf32>
    %c0_2 = arith.constant 0 : index
    %c0_3 = arith.constant 0 : index
    %7 = vector.load %arg3[%c0_2, %c0_3] : memref<2x1024xf32, #tpu.memory_space<vmem>>, vector<2x1024xf32>
    tpu.vector_store %arg3[%c0_2, %c0_3], %6 {strides = array<i32>} : memref<2x1024xf32, #tpu.memory_space<vmem>>, vector<2x1024xf32>,
    return
  }
  func.func @transform_0(%arg0: i32, %arg1: memref<2xf32, #tpu.memory_space<smem>>) -> (i32, i32) {
    %c0_i32 = arith.constant 0 : i32
    %c0_i32_0 = arith.constant 0 : i32
    return %arg0, %c0_i32 : i32, i32
  }
  func.func @transform_1(%arg0: i32, %arg1: memref<2xf32, #tpu.memory_space<smem>>) -> (i32, i32) {
    %c0_i32 = arith.constant 0 : i32
    %c0_i32_0 = arith.constant 0 : i32
    return %arg0, %c0_i32 : i32, i32
  }
}

</mosaic_0001>

<bundles_post_ra>
// kernel: tpu_custom_call.1
= control target key start
LH: loop header
LB: loop body
LE: loop exit
PB: predicated region body
PF: predicated region fallthrough
CT: control target
= control target key end

     0   :  { %s111_s9 = smov [#allocation3]   ;;  %s138_s0 = inlined_call_operand.hbm [shape: f32[2], index: 0, kind: input, shape index: {}]   ;;  %s139_s1 = inlined_call_operand.hbm [shape: f32[2,1024], index: 1, kind: input, shape index: {}]   ;;  %s140_s2 = inlined_call_operand.hbm [shape: f32[2,1024], index: 2, kind: output, shape index: {}]  }
   0x1   :  { %8 = dma.hbm_to_smem %s138_s0, 16, %s111_s9, [#allocation2] }
   0x2   :  { %105 = dma.done.wait [#allocation2], 16 }
   0x3   :  { %106 = vsyncadd [#allocation2], 4294967280 }
   0x4   :  { %10 = sfence }
   0x5   :  { %11 = vsyncpa [#allocation5], 0 }
   0x6   :  { %12 = vsyncpa [#allocation6], 0  ;;  %s112_s12 = smov [#allocation4]  }
   0x7   :  { %s19_s13 = sshll.u32 %s112_s12, 4  ;;  %s20_s13 = int_to_ptr.vmem [resolvable:$true] %s19_s13 }
   0x8   :  { %s73_s14 = scalar_lea.vmem %s20_s13, 256  ;;  %p78_p1 = scmp.lt.s32.totalorder %s20_s13, %s20_s13 }
   0x9   :  { %p74_p0 = scmp.ne.s32.totalorder %s20_s13, %s73_s14  ;;  %p79_p2 = scmp.lt.s32.totalorder %s73_s14, %s73_s14 }
   0xb   :  { %p80_p3 = por %p79_p2, %p78_p1 }
   0xd   :  { %p81_p4 = pnand %p80_p3, %p74_p0 }
   0xf   :  { %84 = shalt.err (!%p81_p4)
}
  0x10   :  { %22 = dma.hbm_to_vmem [thread:$0]  %s139_s1, 256, %s20_s13, [#allocation5]  }
  0x11   :  { %107 = dma.done.wait [#allocation5], 256  }
  0x12   :  { %108 = vsyncadd [#allocation5], 4294967040  ;;  %s28_s0 = sld [smem:[#allocation3]]  ;;  %v26_v0 = vld [vmem:[#allocation4] sm:$0xff]  ;;  %v27_v2 = vld [vmem:[#allocation4 + $0x8] sm:$0xff]  ;;  %s113_s18 = smov [#allocation7]  }
  0x13   :  { %s53_s17 = sld [smem:[#allocation3 + $0x1]]  ;;  %s44_s19 = sshll.u32 %s113_s18, 4  ;;  %s45_s19 = int_to_ptr.vmem [resolvable:$true] %s44_s19 }
  0x14   :  { %s85_s20 = scalar_lea.vmem %s45_s19, 256  ;;  %p90_p6 = scmp.lt.s32.totalorder %s45_s19, %s45_s19 }
  0x15   :  { %p86_p5 = scmp.ne.s32.totalorder %s45_s19, %s85_s20  ;;  %p91_p7 = scmp.lt.s32.totalorder %s85_s20, %s85_s20 }
  0x17   :  { %p92_p8 = por %p91_p7, %p90_p6 }
  0x18   :  { %v30_v1 = vstv %s28_s0 }
  0x19   :  { %v31_v3 = vmax.f32 %v26_v0, %v30_v1  ;;  %v33_v4 = vstv %s53_s17  ;;  %v32_v5 = vmax.f32 %v27_v2, %v30_v1  ;;  %p93_p9 = pnand %p92_p8, %p86_p5 }
  0x1b   :  { %v34_v6 = vmin.f32 %v31_v3, %v33_v4  ;;  %v35_v7 = vmin.f32 %v32_v5, %v33_v4 }
  0x1d   :  { %36 = vst [vmem:[#allocation7] sm:$0xff] %v34_v6  ;;  %37 = vst [vmem:[#allocation7 + $0x8] sm:$0xff] %v35_v7 }
  0x1e   :  { %96 = shalt.err (!%p93_p9)
}
  0x1f   :  { %47 = dma.vmem_to_hbm [thread:$0]  %s45_s19, 256, %s140_s2, [#allocation6]  }
  0x20   :  { %109 = dma.done.wait [#allocation6], 256  }
  0x21   :  { %110 = vsyncadd [#allocation6], 4294967040 }
  0x22   :  { %51 = vsyncpa [#allocation5], 1 }
  0x23   :  { %52 = vsyncpa [#allocation6], 1 }

</bundles_post_ra>
